<compile_context>
chip_gen: v5e
topology: v5e:2x2
jax: 0.10.0
libtpu: 0.0.40
codegen_flags: <defaults>
</compile_context>

<pallas_src>
import functools
import math

import jax
import jax.numpy as jnp
from jax.experimental import pallas as pl
from jax.experimental.pallas import tpu as pltpu

NEG_INF = -1e9


def _tile(dim, pref):
    """Largest tile <= pref that divides dim (toy dims are all <= pref)."""
    t = min(dim, pref)
    while dim % t != 0:
        t -= 1
    return t


# ----------------------------- Pallas kernels -----------------------------

def _linear_kernel(*refs, activation, has_residual):
    """Tiled y = act(x @ w^T + b) [+ residual]; w is torch-layout (N, K) bf16."""
    if has_residual:
        x_ref, w_ref, b_ref, r_ref, o_ref, acc_ref = refs
    else:
        x_ref, w_ref, b_ref, o_ref, acc_ref = refs

    k = pl.program_id(2)

    @pl.when(k == 0)
    def _():
        acc_ref[...] = jnp.zeros_like(acc_ref)

    acc_ref[...] += jax.lax.dot_general(
        x_ref[...].astype(jnp.bfloat16), w_ref[...],
        dimension_numbers=(((1,), (1,)), ((), ())),
        preferred_element_type=jnp.float32)

    @pl.when(k == pl.num_programs(2) - 1)
    def _():
        out = acc_ref[...] + b_ref[...]
        if activation == "relu":
            out = jnp.maximum(out, 0.0)
        if has_residual:
            out = out + r_ref[...]
        o_ref[...] = out


def _ln_linear_kernel(x_ref, lnw_ref, lnb_ref, w_ref, b_ref, o_ref, *, activation):
    """Fused LayerNorm -> linear (w torch-layout (N, D) bf16, resident in VMEM)."""
    x = x_ref[...]                                             # (tm, D) f32
    mu = jnp.mean(x, axis=-1, keepdims=True)
    var = jnp.mean(jnp.square(x - mu), axis=-1, keepdims=True)
    h = (x - mu) * jax.lax.rsqrt(var + 1e-5) * lnw_ref[...] + lnb_ref[...]
    out = jax.lax.dot_general(
        h.astype(jnp.bfloat16), w_ref[...],
        dimension_numbers=(((1,), (1,)), ((), ())),
        preferred_element_type=jnp.float32) + b_ref[...]
    if activation == "relu":
        out = jnp.maximum(out, 0.0)
    o_ref[...] = out


def _ffn_kernel(x_ref, lnw_ref, lnb_ref, w1_ref, b1_ref, w2_ref, b2_ref, o_ref):
    """Fused pre-LN FFN block: x + fc2(relu(fc1(LN(x)))).  Pegasus uses ReLU."""
    x = x_ref[...]
    mu = jnp.mean(x, axis=-1, keepdims=True)
    var = jnp.mean(jnp.square(x - mu), axis=-1, keepdims=True)
    h = (x - mu) * jax.lax.rsqrt(var + 1e-5) * lnw_ref[...] + lnb_ref[...]
    h1 = jax.lax.dot_general(
        h.astype(jnp.bfloat16), w1_ref[...],
        dimension_numbers=(((1,), (1,)), ((), ())),
        preferred_element_type=jnp.float32) + b1_ref[...]
    h1 = jnp.maximum(h1, 0.0)
    h2 = jax.lax.dot_general(
        h1.astype(jnp.bfloat16), w2_ref[...],
        dimension_numbers=(((1,), (1,)), ((), ())),
        preferred_element_type=jnp.float32) + b2_ref[...]
    o_ref[...] = x + h2


def _layernorm_kernel(x_ref, w_ref, b_ref, o_ref):
    x = x_ref[...]
    mu = jnp.mean(x, axis=-1, keepdims=True)
    var = jnp.mean(jnp.square(x - mu), axis=-1, keepdims=True)
    o_ref[...] = (x - mu) * jax.lax.rsqrt(var + 1e-5) * w_ref[...] + b_ref[...]


def _attn_core(q, k, v, bias, scale):
    """Single-head attention: softmax((q*scale) @ k^T + bias) @ v, stats in f32."""
    s = jax.lax.dot_general(
        (q * scale).astype(jnp.bfloat16), k.astype(jnp.bfloat16),
        dimension_numbers=(((1,), (1,)), ((), ())),
        preferred_element_type=jnp.float32) + bias          # mask stays f32
    s = s - jnp.max(s, axis=-1, keepdims=True)
    p = jnp.exp(s)
    p = p * pl.reciprocal(jnp.sum(p, axis=-1, keepdims=True), approx=True)
    return jnp.dot(p.astype(jnp.bfloat16), v.astype(jnp.bfloat16),
                   preferred_element_type=jnp.float32)


def _self_attn_kernel(qkv_ref, pad_ref, o_ref, *, nheads, causal, scale, d_model):
    """One batch element per grid step; all heads in-kernel (lane-dense output)."""
    qkv = qkv_ref[0]                                        # (S, 3D) f32
    pad = pad_ref[0]                                        # (1, S) f32 (1=keep)
    S = qkv.shape[0]
    D = d_model
    dh = D // nheads

    bias = (1.0 - pad) * NEG_INF                            # (1, S)
    if causal:
        qi = jax.lax.broadcasted_iota(jnp.int32, (S, S), 0)
        ki = jax.lax.broadcasted_iota(jnp.int32, (S, S), 1)
        bias = bias + jnp.where(ki > qi, NEG_INF, 0.0)      # (S, S)

    outs = []
    for h in range(nheads):
        q = qkv[:, h * dh:(h + 1) * dh]
        k = qkv[:, D + h * dh:D + (h + 1) * dh]
        v = qkv[:, 2 * D + h * dh:2 * D + (h + 1) * dh]
        outs.append(_attn_core(q, k, v, bias, scale))
    o_ref[0] = jnp.concatenate(outs, axis=-1)


def _cross_attn_kernel(q_ref, kv_ref, pad_ref, o_ref, *, nheads, scale, d_model):
    qall = q_ref[0]                                         # (Sq, D)
    kv = kv_ref[0]                                          # (Sk, 2D)
    pad = pad_ref[0]                                        # (1, Sk)
    D = d_model
    dh = D // nheads
    bias = (1.0 - pad) * NEG_INF

    outs = []
    for h in range(nheads):
        q = qall[:, h * dh:(h + 1) * dh]
        k = kv[:, h * dh:(h + 1) * dh]
        v = kv[:, D + h * dh:D + (h + 1) * dh]
        outs.append(_attn_core(q, k, v, bias, scale))
    o_ref[0] = jnp.concatenate(outs, axis=-1)


def _lmhead_ce_kernel(y_ref, e_ref, b_ref, lab_ref,
                      logits_ref, loss_ref, valid_ref,
                      m_scr, l_scr, t_scr, *, tv):
    """Fused tied LM head + token cross entropy, online-LSE over vocab tiles."""
    j = pl.program_id(1)

    @pl.when(j == 0)
    def _():
        m_scr[...] = jnp.full_like(m_scr, -jnp.inf)
        l_scr[...] = jnp.zeros_like(l_scr)
        t_scr[...] = jnp.zeros_like(t_scr)

    logits = jax.lax.dot_general(
        y_ref[...].astype(jnp.bfloat16), e_ref[...].astype(jnp.bfloat16),
        dimension_numbers=(((1,), (1,)), ((), ())),
        preferred_element_type=jnp.float32) + b_ref[...]     # (tm, tv)
    logits_ref[...] = logits

    labels = lab_ref[...]                                    # (tm, 1) int32
    ids = jax.lax.broadcasted_iota(jnp.int32, logits.shape, 1) + j * tv
    t_scr[...] += jnp.sum(jnp.where(ids == labels, logits, 0.0),
                          axis=-1, keepdims=True)

    m_prev = m_scr[...]
    m_new = jnp.maximum(m_prev, jnp.max(logits, axis=-1, keepdims=True))
    l_scr[...] = (l_scr[...] * jnp.exp(m_prev - m_new)
                  + jnp.sum(jnp.exp(logits - m_new), axis=-1, keepdims=True))
    m_scr[...] = m_new

    @pl.when(j == pl.num_programs(1) - 1)
    def _():
        valid = (labels != -100).astype(jnp.float32)         # ignore_index=-100
        lse = m_scr[...] + jnp.log(l_scr[...])
        loss_ref[...] = (lse - t_scr[...]) * valid
        valid_ref[...] = valid


# ----------------------------- Pallas wrappers -----------------------------

def tiled_linear(x2d, w, b, residual=None, activation=None,
                 tm_pref=256, tn_pref=512, tk_pref=512):
    """x2d:(M,K) f32, w:(N,K) bf16 torch-layout, b:(N,) f32 -> (M,N) f32."""
    M, K = x2d.shape
    N = w.shape[0]
    tm, tn, tk = _tile(M, tm_pref), _tile(N, tn_pref), _tile(K, tk_pref)
    grid = (M // tm, N // tn, K // tk)

    in_specs = [pl.BlockSpec((tm, tk), lambda i, j, k: (i, k)),
                pl.BlockSpec((tn, tk), lambda i, j, k: (j, k)),
                pl.BlockSpec((1, tn), lambda i, j, k: (0, j))]
    args = [x2d, w, b.reshape(1, N)]
    if residual is not None:
        in_specs.append(pl.BlockSpec((tm, tn), lambda i, j, k: (i, j)))
        args.append(residual)

    return pl.pallas_call(
        functools.partial(_linear_kernel, activation=activation,
                          has_residual=residual is not None),
        out_shape=jax.ShapeDtypeStruct((M, N), jnp.float32),
        grid=grid,
        in_specs=in_specs,
        out_specs=pl.BlockSpec((tm, tn), lambda i, j, k: (i, j)),
        scratch_shapes=[pltpu.VMEM((tm, tn), jnp.float32)],
        compiler_params=pltpu.CompilerParams(
            dimension_semantics=("parallel", "parallel", "arbitrary")),
    )(*args)


def fused_ln_linear(x2d, lnw, lnb, w, b, activation=None, tm_pref=256):
    M, D = x2d.shape
    N = w.shape[0]
    tm = _tile(M, tm_pref)
    return pl.pallas_call(
        functools.partial(_ln_linear_kernel, activation=activation),
        out_shape=jax.ShapeDtypeStruct((M, N), jnp.float32),
        grid=(M // tm,),
        in_specs=[pl.BlockSpec((tm, D), lambda i: (i, 0)),
                  pl.BlockSpec((1, D), lambda i: (0, 0)),
                  pl.BlockSpec((1, D), lambda i: (0, 0)),
                  pl.BlockSpec((N, D), lambda i: (0, 0)),
                  pl.BlockSpec((1, N), lambda i: (0, 0))],
        out_specs=pl.BlockSpec((tm, N), lambda i: (i, 0)),
        compiler_params=pltpu.CompilerParams(dimension_semantics=("parallel",)),
    )(x2d, lnw.reshape(1, D), lnb.reshape(1, D), w, b.reshape(1, N))


def fused_ffn(x2d, lnw, lnb, w1, b1, w2, b2, tm_pref=256):
    M, D = x2d.shape
    F = w1.shape[0]
    tm = _tile(M, tm_pref)
    return pl.pallas_call(
        _ffn_kernel,
        out_shape=jax.ShapeDtypeStruct((M, D), jnp.float32),
        grid=(M // tm,),
        in_specs=[pl.BlockSpec((tm, D), lambda i: (i, 0)),
                  pl.BlockSpec((1, D), lambda i: (0, 0)),
                  pl.BlockSpec((1, D), lambda i: (0, 0)),
                  pl.BlockSpec((F, D), lambda i: (0, 0)),
                  pl.BlockSpec((1, F), lambda i: (0, 0)),
                  pl.BlockSpec((D, F), lambda i: (0, 0)),
                  pl.BlockSpec((1, D), lambda i: (0, 0))],
        out_specs=pl.BlockSpec((tm, D), lambda i: (i, 0)),
        compiler_params=pltpu.CompilerParams(dimension_semantics=("parallel",)),
    )(x2d, lnw.reshape(1, D), lnb.reshape(1, D), w1, b1.reshape(1, F),
      w2, b2.reshape(1, D))


def pallas_layernorm(x2d, w, b, tm_pref=256):
    M, D = x2d.shape
    tm = _tile(M, tm_pref)
    return pl.pallas_call(
        _layernorm_kernel,
        out_shape=jax.ShapeDtypeStruct((M, D), jnp.float32),
        grid=(M // tm,),
        in_specs=[pl.BlockSpec((tm, D), lambda i: (i, 0)),
                  pl.BlockSpec((1, D), lambda i: (0, 0)),
                  pl.BlockSpec((1, D), lambda i: (0, 0))],
        out_specs=pl.BlockSpec((tm, D), lambda i: (i, 0)),
        compiler_params=pltpu.CompilerParams(dimension_semantics=("parallel",)),
    )(x2d, w.reshape(1, D), b.reshape(1, D))


def pallas_self_attention(qkv, pad, nheads, causal):
    """qkv:(B,S,3D) packed [q|k|v]; pad:(B,S) f32 keep-mask."""
    B, S, threeD = qkv.shape
    D = threeD // 3
    scale = 1.0 / math.sqrt(D // nheads)                     # Pegasus q scaling
    return pl.pallas_call(
        functools.partial(_self_attn_kernel, nheads=nheads, causal=causal,
                          scale=scale, d_model=D),
        out_shape=jax.ShapeDtypeStruct((B, S, D), jnp.float32),
        grid=(B,),
        in_specs=[pl.BlockSpec((1, S, threeD), lambda b: (b, 0, 0)),
                  pl.BlockSpec((1, 1, S), lambda b: (b, 0, 0))],
        out_specs=pl.BlockSpec((1, S, D), lambda b: (b, 0, 0)),
        compiler_params=pltpu.CompilerParams(dimension_semantics=("parallel",)),
    )(qkv, pad.reshape(B, 1, S))


def pallas_cross_attention(q, kv, pad, nheads):
    """q:(B,Sq,D); kv:(B,Sk,2D) packed [k|v]; pad:(B,Sk) f32 keep-mask."""
    B, Sq, D = q.shape
    Sk = kv.shape[1]
    scale = 1.0 / math.sqrt(D // nheads)
    return pl.pallas_call(
        functools.partial(_cross_attn_kernel, nheads=nheads, scale=scale, d_model=D),
        out_shape=jax.ShapeDtypeStruct((B, Sq, D), jnp.float32),
        grid=(B,),
        in_specs=[pl.BlockSpec((1, Sq, D), lambda b: (b, 0, 0)),
                  pl.BlockSpec((1, Sk, 2 * D), lambda b: (b, 0, 0)),
                  pl.BlockSpec((1, 1, Sk), lambda b: (b, 0, 0))],
        out_specs=pl.BlockSpec((1, Sq, D), lambda b: (b, 0, 0)),
        compiler_params=pltpu.CompilerParams(dimension_semantics=("parallel",)),
    )(q, kv, pad.reshape(B, 1, Sk))


def pallas_lmhead_ce(y2d, embed, lbias, labels1d, tm_pref=256, tv_pref=2048):
    """Fused tied LM head + cross entropy.  Returns (mean_loss, logits)."""
    M, D = y2d.shape
    V = embed.shape[0]
    tm, tv = _tile(M, tm_pref), _tile(V, tv_pref)
    grid = (M // tm, V // tv)

    logits, row_loss, row_valid = pl.pallas_call(
        functools.partial(_lmhead_ce_kernel, tv=tv),
        out_shape=(jax.ShapeDtypeStruct((M, V), jnp.float32),
                   jax.ShapeDtypeStruct((M, 1), jnp.float32),
                   jax.ShapeDtypeStruct((M, 1), jnp.float32)),
        grid=grid,
        in_specs=[pl.BlockSpec((tm, D), lambda i, j: (i, 0)),
                  pl.BlockSpec((tv, D), lambda i, j: (j, 0)),
                  pl.BlockSpec((1, tv), lambda i, j: (0, j)),
                  pl.BlockSpec((tm, 1), lambda i, j: (i, 0))],
        out_specs=(pl.BlockSpec((tm, tv), lambda i, j: (i, j)),
                   pl.BlockSpec((tm, 1), lambda i, j: (i, 0)),
                   pl.BlockSpec((tm, 1), lambda i, j: (i, 0))),
        scratch_shapes=[pltpu.VMEM((tm, 1), jnp.float32),
                        pltpu.VMEM((tm, 1), jnp.float32),
                        pltpu.VMEM((tm, 1), jnp.float32)],
        compiler_params=pltpu.CompilerParams(
            dimension_semantics=("parallel", "arbitrary")),
    )(y2d, embed, lbias.reshape(1, V), labels1d.reshape(M, 1).astype(jnp.int32))

    loss_sum = jnp.sum(row_loss)
    cnt = jnp.maximum(jnp.sum(row_valid), 1.0)    # guard: all labels == -100
    return loss_sum / cnt, logits


# ----------------------------- model glue (plain JAX) -----------------------------

def sinusoidal_positions(n_pos, dim):
    pos = jnp.arange(n_pos, dtype=jnp.float32)[:, None]
    j = jnp.arange(dim, dtype=jnp.float32)[None, :]
    angle = pos / jnp.power(10000.0, (2.0 * jnp.floor(j / 2.0)) / dim)
    return jnp.concatenate([jnp.sin(angle[:, 0::2]), jnp.cos(angle[:, 1::2])], axis=1)


def shift_tokens_right(labels, pad_id, start_id):
    shifted = jnp.roll(labels, 1, axis=1)
    shifted = shifted.at[:, 0].set(start_id)
    return jnp.where(shifted == -100, pad_id, shifted)


def init_params(key, cfg):
    d, ffn, V = cfg["d_model"], cfg["ffn"], cfg["vocab"]
    keys = iter(jax.random.split(key, 512))

    def dense(shape, dtype=jnp.bfloat16):      # matmul weights stored bf16
        return (jax.random.normal(next(keys), shape, jnp.float32) * 0.02).astype(dtype)

    def zeros(shape):
        return jnp.zeros(shape, jnp.float32)

    def ones(shape):
        return jnp.ones(shape, jnp.float32)

    def self_attn():
        # q/k/v projections fused into one (3D, D) torch-layout weight
        return dict(qkv_w=dense((3 * d, d)), qkv_b=zeros((3 * d,)),
                    o_w=dense((d, d)), o_b=zeros((d,)))

    def cross_attn():
        return dict(q_w=dense((d, d)), q_b=zeros((d,)),
                    kv_w=dense((2 * d, d)), kv_b=zeros((2 * d,)),
                    o_w=dense((d, d)), o_b=zeros((d,)))

    def enc_layer():
        return dict(attn=self_attn(),
                    attn_ln_w=ones((d,)), attn_ln_b=zeros((d,)),
                    fc1_w=dense((ffn, d)), fc1_b=zeros((ffn,)),
                    fc2_w=dense((d, ffn)), fc2_b=zeros((d,)),
                    ffn_ln_w=ones((d,)), ffn_ln_b=zeros((d,)))

    def dec_layer():
        p = enc_layer()
        p.update(dict(cross=cross_attn(),
                      cross_ln_w=ones((d,)), cross_ln_b=zeros((d,))))
        return p

    return dict(
        shared_embed=dense((V, d), jnp.float32),       # gather table + tied LM head
        final_logits_bias=zeros((V,)),
        enc_layers=[enc_layer() for _ in range(cfg["enc_layers"])],
        dec_layers=[dec_layer() for _ in range(cfg["dec_layers"])],
        enc_ln_w=ones((d,)), enc_ln_b=zeros((d,)),
        dec_ln_w=ones((d,)), dec_ln_b=zeros((d,)),
    )


def encoder_layer(p, x, enc_pad, nheads):
    B, S, D = x.shape
    x2d = x.reshape(B * S, D)
    qkv = fused_ln_linear(x2d, p["attn_ln_w"], p["attn_ln_b"],
                          p["attn"]["qkv_w"], p["attn"]["qkv_b"]).reshape(B, S, 3 * D)
    ctx = pallas_self_attention(qkv, enc_pad, nheads, causal=False)
    x2d = tiled_linear(ctx.reshape(B * S, D), p["attn"]["o_w"], p["attn"]["o_b"],
                       residual=x2d)
    x2d = fused_ffn(x2d, p["ffn_ln_w"], p["ffn_ln_b"],
                    p["fc1_w"], p["fc1_b"], p["fc2_w"], p["fc2_b"])
    return x2d.reshape(B, S, D)


def decoder_layer(p, y, enc_out, enc_pad, dec_pad, nheads):
    B, St, D = y.shape
    S = enc_out.shape[1]
    y2d = y.reshape(B * St, D)

    # causal self-attention
    qkv = fused_ln_linear(y2d, p["attn_ln_w"], p["attn_ln_b"],
                          p["attn"]["qkv_w"], p["attn"]["qkv_b"]).reshape(B, St, 3 * D)
    ctx = pallas_self_attention(qkv, dec_pad, nheads, causal=True)
    y2d = tiled_linear(ctx.reshape(B * St, D), p["attn"]["o_w"], p["attn"]["o_b"],
                       residual=y2d)

    # cross-attention (LN only on the query path, K/V straight from enc_out)
    q = fused_ln_linear(y2d, p["cross_ln_w"], p["cross_ln_b"],
                        p["cross"]["q_w"], p["cross"]["q_b"]).reshape(B, St, D)
    kv = tiled_linear(enc_out.reshape(B * S, D), p["cross"]["kv_w"],
                      p["cross"]["kv_b"]).reshape(B, S, 2 * D)
    ctx = pallas_cross_attention(q, kv, enc_pad, nheads)
    y2d = tiled_linear(ctx.reshape(B * St, D), p["cross"]["o_w"], p["cross"]["o_b"],
                       residual=y2d)

    # FFN
    y2d = fused_ffn(y2d, p["ffn_ln_w"], p["ffn_ln_b"],
                    p["fc1_w"], p["fc1_b"], p["fc2_w"], p["fc2_b"])
    return y2d.reshape(B, St, D)


def pegasus_forward(params, cfg, input_ids, attention_mask, labels):
    B, S = input_ids.shape
    D, V, H = cfg["d_model"], cfg["vocab"], cfg["nheads"]
    embed_scale = math.sqrt(D)                      # scale_embedding=True in Pegasus
    pos = sinusoidal_positions(cfg["max_pos"], D)

    enc_pad = attention_mask.astype(jnp.float32)    # (B, S), 1 = keep

    # ---- encoder ----
    # TODO(synk): token-embedding gather + pos add stay in XLA (jnp.take); dropout
    # omitted (deterministic / eval-mode forward).
    x = jnp.take(params["shared_embed"], input_ids, axis=0) * embed_scale + pos[:S]
    for lp in params["enc_layers"]:
        x = encoder_layer(lp, x, enc_pad, H)
    enc_out = pallas_layernorm(x.reshape(-1, D), params["enc_ln_w"],
                               params["enc_ln_b"]).reshape(B, S, D)

    # ---- decoder (inputs = labels shifted right, Pegasus-style) ----
    dec_ids = shift_tokens_right(labels, cfg["pad_id"], cfg["decoder_start_id"])
    St = dec_ids.shape[1]
    dec_pad = jnp.ones((B, St), jnp.float32)        # HF default: causal mask only
    y = jnp.take(params["shared_embed"], dec_ids, axis=0) * embed_scale + pos[:St]
    for lp in params["dec_layers"]:
        y = decoder_layer(lp, y, enc_out, enc_pad, dec_pad, H)
    y2d = pallas_layernorm(y.reshape(-1, D), params["dec_ln_w"], params["dec_ln_b"])

    # ---- fused tied LM head (+ final_logits_bias) + token cross entropy ----
    loss, logits = pallas_lmhead_ce(y2d, params["shared_embed"],
                                    params["final_logits_bias"], labels.reshape(-1))
    return {"loss": loss, "logits": logits.reshape(B, St, V)}


class PegasusWrapper:
    """JAX/Pallas analogue of the PyTorch PegasusWrapper."""

    def __init__(self, cfg, params, max_length):
        self.cfg = cfg
        self.params = params
        self.max_length = max_length   # generation-only; unused in forward

    def __call__(self, input_variables):
        return pegasus_forward(self.params, self.cfg,
                               input_variables["input_ids"],
                               input_variables["attention_mask"],
                               input_variables["labels"])


# ----------------------------- main -----------------------------

if __name__ == "__main__":
    cfg = dict(vocab=128, d_model=32, nheads=4, ffn=64,
               enc_layers=1, dec_layers=1,
               pad_id=0, decoder_start_id=0, max_pos=64)

    key = jax.random.PRNGKey(0)
    pkey, ikey, lkey = jax.random.split(key, 3)
    params = init_params(pkey, cfg)

    B, S = 2, 8
    input_ids = jax.random.randint(ikey, (B, S), 1, cfg["vocab"], dtype=jnp.int32)
    attention_mask = jnp.ones((B, S), jnp.int32).at[1, 6:].set(0)   # some padding
    labels = jax.random.randint(lkey, (B, S), 1, cfg["vocab"], dtype=jnp.int32)

    model = PegasusWrapper(cfg, params, max_length=S)
    out = model({"input_ids": input_ids,
                 "attention_mask": attention_mask,
                 "labels": labels})

    jax.block_until_ready(out["loss"])
    jax.block_until_ready(out["logits"])
    assert out["logits"].shape == (B, S, cfg["vocab"])
    assert out["loss"].shape == ()
    assert bool(jnp.isfinite(out["loss"]))
    print("KERNEL_OK")
</pallas_src>

<mosaic_0001>
module attributes {stable_mosaic.version = 11 : i64} {
  func.func @_ln_linear_kernel(%arg0: i32, %arg1: memref<16x32xf32, #tpu.memory_space<vmem>>, %arg2: memref<1x32xf32, #tpu.memory_space<vmem>>, %arg3: memref<1x32xf32, #tpu.memory_space<vmem>>, %arg4: memref<96x32xbf16, #tpu.memory_space<vmem>>, %arg5: memref<1x96xf32, #tpu.memory_space<vmem>>, %arg6: memref<16x96xf32, #tpu.memory_space<vmem>>) attributes {dimension_semantics = [#tpu.dimension_semantics<parallel>], iteration_bounds = array<i64: 1>, scalar_prefetch = 0 : i64, scratch_operands = 0 : i64, tpu.core_type = #tpu.core_type<tc>, window_params = [{transform_indices = @transform_0, window_bounds = array<i64: 16, 32>}, {pipeline_mode = #tpu.pipeline_mode<synchronous>, transform_indices = @transform_1, window_bounds = array<i64: 1, 32>}, {pipeline_mode = #tpu.pipeline_mode<synchronous>, transform_indices = @transform_2, window_bounds = array<i64: 1, 32>}, {pipeline_mode = #tpu.pipeline_mode<synchronous>, transform_indices = @transform_3, window_bounds = array<i64: 96, 32>}, {pipeline_mode = #tpu.pipeline_mode<synchronous>, transform_indices = @transform_4, window_bounds = array<i64: 1, 96>}, {transform_indices = @transform_5, window_bounds = array<i64: 16, 96>}]} {
    %c0 = arith.constant 0 : index
    %c0_0 = arith.constant 0 : index
    %0 = vector.load %arg1[%c0, %c0_0] : memref<16x32xf32, #tpu.memory_space<vmem>>, vector<16x32xf32>
    %cst = arith.constant dense<0.000000e+00> : vector<16xf32>
    %1 = vector.multi_reduction <add>, %0, %cst [1] : vector<16x32xf32> to vector<16xf32>
    %2 = vector.shape_cast %1 : vector<16xf32> to vector<16x1xf32>
    %cst_1 = arith.constant 3.200000e+01 : f32
    %3 = vector.broadcast %cst_1 : f32 to vector<16x1xf32>
    %4 = arith.divf %2, %3 : vector<16x1xf32>
    %5 = vector.broadcast %4 : vector<16x1xf32> to vector<16x32xf32>
    %6 = arith.subf %0, %5 : vector<16x32xf32>
    %7 = arith.mulf %6, %6 : vector<16x32xf32>
    %cst_2 = arith.constant dense<0.000000e+00> : vector<16xf32>
    %8 = vector.multi_reduction <add>, %7, %cst_2 [1] : vector<16x32xf32> to vector<16xf32>
    %9 = vector.shape_cast %8 : vector<16xf32> to vector<16x1xf32>
    %cst_3 = arith.constant 3.200000e+01 : f32
    %10 = vector.broadcast %cst_3 : f32 to vector<16x1xf32>
    %11 = arith.divf %9, %10 : vector<16x1xf32>
    %12 = vector.broadcast %4 : vector<16x1xf32> to vector<16x32xf32>
    %13 = arith.subf %0, %12 : vector<16x32xf32>
    %cst_4 = arith.constant 9.99999974E-6 : f32
    %14 = vector.broadcast %cst_4 : f32 to vector<16x1xf32>
    %15 = arith.addf %11, %14 : vector<16x1xf32>
    %16 = math.rsqrt %15 : vector<16x1xf32>
    %17 = vector.broadcast %16 : vector<16x1xf32> to vector<16x32xf32>
    %18 = arith.mulf %13, %17 : vector<16x32xf32>
    %c0_5 = arith.constant 0 : index
    %c0_6 = arith.constant 0 : index
    %19 = vector.load %arg2[%c0_5, %c0_6] : memref<1x32xf32, #tpu.memory_space<vmem>>, vector<1x32xf32>
    %20 = vector.broadcast %19 : vector<1x32xf32> to vector<16x32xf32>
    %21 = arith.mulf %18, %20 : vector<16x32xf32>
    %c0_7 = arith.constant 0 : index
    %c0_8 = arith.constant 0 : index
    %22 = vector.load %arg3[%c0_7, %c0_8] : memref<1x32xf32, #tpu.memory_space<vmem>>, vector<1x32xf32>
    %23 = vector.broadcast %22 : vector<1x32xf32> to vector<16x32xf32>
    %24 = arith.addf %21, %23 : vector<16x32xf32>
    %25 = arith.truncf %24 : vector<16x32xf32> to vector<16x32xbf16>
    %c0_9 = arith.constant 0 : index
    %c0_10 = arith.constant 0 : index
    %26 = vector.load %arg4[%c0_9, %c0_10] : memref<96x32xbf16, #tpu.memory_space<vmem>>, vector<96x32xbf16>
    %cst_11 = arith.constant dense<0.000000e+00> : vector<16x96xf32>
    %27 = tpu.matmul %25, %26, %cst_11 {dimension_numbers = #tpu.dot_dimension_numbers<[1], [1], [0], [0], [0, 0, 1, 0], [], []>} : vector<16x32xbf16>, vector<96x32xbf16>, vector<16x96xf32> -> vector<16x96xf32>
    %c0_12 = arith.constant 0 : index
    %c0_13 = arith.constant 0 : index
    %28 = vector.load %arg5[%c0_12, %c0_13] : memref<1x96xf32, #tpu.memory_space<vmem>>, vector<1x96xf32>
    %29 = vector.broadcast %28 : vector<1x96xf32> to vector<16x96xf32>
    %30 = arith.addf %27, %29 : vector<16x96xf32>
    %c0_14 = arith.constant 0 : index
    %c0_15 = arith.constant 0 : index
    %31 = vector.load %arg6[%c0_14, %c0_15] : memref<16x96xf32, #tpu.memory_space<vmem>>, vector<16x96xf32>
    tpu.vector_store %arg6[%c0_14, %c0_15], %30 {strides = array<i32>} : memref<16x96xf32, #tpu.memory_space<vmem>>, vector<16x96xf32>,
    return
  }
  func.func @transform_0(%arg0: i32) -> (i32, i32) {
    %c0_i32 = arith.constant 0 : i32
    %c0_i32_0 = arith.constant 0 : i32
    return %arg0, %c0_i32 : i32, i32
  }
  func.func @transform_1(%arg0: i32) -> (i32, i32) {
    %c0_i32 = arith.constant 0 : i32
    %c0_i32_0 = arith.constant 0 : i32
    %c0_i32_1 = arith.constant 0 : i32
    return %c0_i32, %c0_i32_0 : i32, i32
  }
  func.func @transform_2(%arg0: i32) -> (i32, i32) {
    %c0_i32 = arith.constant 0 : i32
    %c0_i32_0 = arith.constant 0 : i32
    %c0_i32_1 = arith.constant 0 : i32
    return %c0_i32, %c0_i32_0 : i32, i32
  }
  func.func @transform_3(%arg0: i32) -> (i32, i32) {
    %c0_i32 = arith.constant 0 : i32
    %c0_i32_0 = arith.constant 0 : i32
    %c0_i32_1 = arith.constant 0 : i32
    return %c0_i32, %c0_i32_0 : i32, i32
  }
  func.func @transform_4(%arg0: i32) -> (i32, i32) {
    %c0_i32 = arith.constant 0 : i32
    %c0_i32_0 = arith.constant 0 : i32
    %c0_i32_1 = arith.constant 0 : i32
    return %c0_i32, %c0_i32_0 : i32, i32
  }
  func.func @transform_5(%arg0: i32) -> (i32, i32) {
    %c0_i32 = arith.constant 0 : i32
    %c0_i32_0 = arith.constant 0 : i32
    return %arg0, %c0_i32 : i32, i32
  }
}

</mosaic_0001>

<bundles_post_ra>
// kernel: tpu_custom_call.1
= control target key start
LH: loop header
LB: loop body
LE: loop exit
PB: predicated region body
PF: predicated region fallthrough
CT: control target
= control target key end

     0   :  { %vm24_vm0 = vcmask 261120   ;;  %s342_s0 = inlined_call_operand.vmem [shape: f32[16,32], index: 0, kind: input, shape index: {}]   ;;  %s343_s1 = inlined_call_operand.vmem [shape: f32[1,32], index: 1, kind: input, shape index: {}]   ;;  %s344_s2 = inlined_call_operand.vmem [shape: f32[1,32], index: 2, kind: input, shape index: {}]   ;;  %s345_s3 = inlined_call_operand.vmem [shape: bf16[96,32], index: 3, kind: input, shape index: {}]   ;;  %s346_s4 = inlined_call_operand.vmem [shape: f32[1,96], index: 4, kind: input, shape index: {}]   ;;  %s347_s5 = inlined_call_operand.hbm [shape: f32[16,96], index: 5, kind: output, shape index: {}]  }
   0x1   :  { %v22_v0 = vld [vmem:[%s342_s0] sm:$0xff] }
   0x2   :  { %v25_v1 = vsel %vm24_vm0, %v22_v0, 0.0 }
   0x3   :  { %26 = vadd.xlane.f32.xlu0 %v25_v1 }
   0x4   :  { %10 = vsyncpa [#allocation3], 0  ;;  %v23_v2 = vld [vmem:[%s342_s0 + $0x8] sm:$0xff]  ;;  %v261_v4 = vmov 32.0   ;;  %v220_v10 = vld [vmem:[%s345_s3 + $0x20] sm:$0xff]  ;;  %vm170_vm8 = vcmask 785408  }
   0x5   :  { %v28_v3 = vsel %vm24_vm0, %v23_v2, 0.0  ;;  %229 = vrcp.f32 %v261_v4  ;;  %v221_v7 = vld [vmem:[%s345_s3 + $0x28] sm:$0xff]  ;;  %v151_v12 = vsel %vm24_vm0, %v220_v10, 0  ;;  %v219_v25 = vld [vmem:[%s345_s3 + $0x18] sm:$0xff]  ;;  %v218_v27 = vld [vmem:[%s345_s3 + $0x10] sm:$0xff]  ;;  %s263_s16 = smov 128  }
   0x6   :  { %v154_v9 = vsel %vm24_vm0, %v221_v7, 0  ;;  %v148_v26 = vsel %vm24_vm0, %v219_v25, 0  ;;  %v145_v28 = vsel %vm24_vm0, %v218_v27, 0  ;;  %v217_v29 = vld [vmem:[%s345_s3 + $0x8] sm:$0xff]  ;;  %v216_v31 = vld [vmem:[%s345_s3] sm:$0xff]  ;;  %s264_s17 = smov 8  }
   0x7   :  { %158 = vmatpush.bf16.xpose.msra.mxu0 %v154_v9  ;;  %v142_v30 = vsel %vm24_vm0, %v217_v29, 0  ;;  %v139_v32 = vsel %vm24_vm0, %v216_v31, 0  ;;  %v226_v52 = vld [vmem:[%s343_s1] ss:$0 sm:$0xff]  ;;  %s262_s1 = smov [#allocation2]  }
   0x8   :  { %v227_v57 = vld [vmem:[%s344_s2] ss:$0 sm:$0xff]  ;;  %s177_s13 = sshll.u32 %s262_s1, 4  ;;  %s179_s2 = sshll.u32 %s347_s5, 4  ;;  %s178_s13 = int_to_ptr.vmem [resolvable:$true] %s177_s13  ;;  %s180_s2 = int_to_ptr.hbm [resolvable:$true] %s179_s2 }
   0x9   :  { %v228_v62 = vld [vmem:[%s346_s4] ss:$0 sm:$0xff] }
   0xb   :  { %29 = vadd.xlane.f32.xlu0 %v28_v3  ;;  %v230_v5 = vpop.eup %229 }
   0xc   :  { %v32_v6 = vmul.f32 32.0, %v230_v5  ;;  %vm36_vm1 = vweird.f32 %v230_v5 }
   0xe   :  { %v33_v8 = vsub.f32 1.0, %v32_v6 }
   0xf   :  { %159 = vmatpush.bf16.xpose.msra.mxu0 %v151_v12 }
  0x10   :  { %v34_v11 = vmul.f32 %v230_v5, %v33_v8 }
  0x12   :  { %v35_v13 = vadd.f32 %v230_v5, %v34_v11 }
  0x14   :  { %v37_v14 = vsel %vm36_vm1, %v230_v5, %v35_v13 }
  0x17   :  { %160 = vmatpush.bf16.xpose.msra.mxu0 %v148_v26 }
  0x1f   :  { %161 = vmatpush.bf16.xpose.msra.mxu0 %v145_v28 }
  0x27   :  { %162 = vmatpush.bf16.xpose.msra.mxu0 %v142_v30 }
  0x2f   :  { %163 = vmatpush.bf16.xpose.msra.mxu0 %v139_v32 }
  0x76   :  { %v27_v15 = vpop.xlane.xlu0 %26 }
  0x77   :  { %v38_v16 = vmul.f32 %v37_v14, %v27_v15 }
  0x79   :  { %v40_v17 = vsub.f32 %v22_v0, %v38_v16 }
  0x7b   :  { %v42_v18 = vmul.f32 %v40_v17, %v40_v17 }
  0x7d   :  { %v44_v19 = vsel %vm24_vm0, %v42_v18, 0.0 }
  0x7e   :  { %45 = vadd.xlane.f32.xlu1 %v44_v19  ;;  %v30_v20 = vpop.xlane.xlu0 %29 }
  0x7f   :  { %v39_v21 = vmul.f32 %v37_v14, %v30_v20 }
  0x81   :  { %v41_v22 = vsub.f32 %v23_v2, %v39_v21 }
  0x83   :  { %v43_v23 = vmul.f32 %v41_v22, %v41_v22 }
  0x85   :  { %v47_v24 = vsel %vm24_vm0, %v43_v23, 0.0 }
  0x86   :  { %48 = vadd.xlane.f32.xlu1 %v47_v24 }
  0xf1   :  { %v46_v33 = vpop.xlane.xlu1 %45 }
  0xf2   :  { %v50_v34 = vmul.f32 %v46_v33, %v37_v14 }
  0xf4   :  { %v52_v35 = vadd.f32 1e-05, %v50_v34 }
  0xf6   :  { %231 = vrsqrt.f32 %v52_v35  ;;  %vm60_vm3 = vweird.f32 %v52_v35 }
  0xf9   :  { %v49_v36 = vpop.xlane.xlu1 %48 }
  0xfa   :  { %v51_v37 = vmul.f32 %v49_v36, %v37_v14 }
  0xfc   :  { %v232_v38 = vpop.eup %231  ;;  %v53_v39 = vadd.f32 1e-05, %v51_v37 }
  0xfd   :  { %v55_v40 = vmul.f32 %v232_v38, %v52_v35  ;;  %vm61_vm2 = vweird.f32 %v232_v38 }
  0xfe   :  { %233 = vrsqrt.f32 %v53_v39  ;;  %vm62_vm4 = vmor %vm60_vm3, %vm61_vm2  ;;  %vm70_vm6 = vweird.f32 %v53_v39 }
  0xff   :  { %v56_v41 = vmul.f32 %v232_v38, %v55_v40 }
 0x101   :  { %v57_v42 = vmul.f32 0.5, %v56_v41 }
 0x103   :  { %v58_v43 = vsub.f32 1.5, %v57_v42 }
 0x104   :  { %v234_v44 = vpop.eup %233 }
 0x105   :  { %v59_v45 = vmul.f32 %v232_v38, %v58_v43  ;;  %v65_v46 = vmul.f32 %v234_v44, %v53_v39  ;;  %vm71_vm5 = vweird.f32 %v234_v44 }
 0x106   :  { %vm72_vm7 = vmor %vm70_vm6, %vm71_vm5 }
 0x107   :  { %v66_v47 = vmul.f32 %v234_v44, %v65_v46  ;;  %v63_v48 = vsel %vm62_vm4, %v232_v38, %v59_v45 }
 0x108   :  { %v74_v51 = vmul.f32 %v63_v48, %v40_v17 }
 0x109   :  { %v67_v49 = vmul.f32 0.5, %v66_v47 }
 0x10a   :  { %v80_v56 = vmul.f32 %v226_v52, %v74_v51 }
 0x10b   :  { %v68_v50 = vsub.f32 1.5, %v67_v49 }
 0x10c   :  { %v86_v59 = vadd.f32 %v227_v57, %v80_v56 }
 0x10d   :  { %v69_v53 = vmul.f32 %v234_v44, %v68_v50 }
 0x10f   :  { %v73_v54 = vsel %vm72_vm7, %v234_v44, %v69_v53 }
 0x110   :  { %v75_v55 = vmul.f32 %v73_v54, %v41_v22 }
 0x112   :  { %v81_v58 = vmul.f32 %v226_v52, %v75_v55 }
 0x114   :  { %v87_v60 = vadd.f32 %v227_v57, %v81_v58 }
 0x116   :  { %v88_v61 = vpack.c.bf16 %v87_v60, %v86_v59 }
 0x118   :  { %215 = vmatmul.msk.bf16.vlgmr.msra.gmra.mxu0 %vm24_vm0, %v88_v61 }
 0x195   :  { %v165_v63 = vpop.f32.mrf.mxu0 }
 0x196   :  { %v166_v0 = vadd.f32 %v228_v62, %v165_v63 }
 0x198   :  { %171 = vst.msk [vmem:[#allocation2] sm:$0xff] %vm170_vm8, %v166_v0 }
 0x19d   :  { %v167_v1 = vpop.f32.mrf.mxu0 }
 0x19e   :  { %v168_v2 = vadd.f32 %v228_v62, %v167_v1 }
 0x1a0   :  { %172 = vst.msk [vmem:[#allocation2 + $0x8] sm:$0xff] %vm170_vm8, %v168_v2 }
 0x1a1   :  { %185 = dma.vmem_to_hbm [thread:$0]  %s178_s13, 256, %s180_s2, [#allocation3], %s263_s16, %s263_s16, %s264_s17  }
 0x1a2   :  { %259 = dma.done.wait [#allocation3], 256  }
 0x1a3   :  { %260 = vsyncadd [#allocation3], 4294967040 }
 0x1a4   :  { %190 = vsyncpa [#allocation3], 1 }

</bundles_post_ra>
